<compile_context>
chip_gen: v7x
topology: tpu7x:2x2x1
jax: 0.10.0
libtpu: 0.0.40
codegen_flags: <defaults>
</compile_context>

<pallas_src>
import jax
import jax.numpy as jnp
from jax.experimental import pallas as pl
from jax.experimental.pallas import tpu as pltpu


# ------------------------------- kernel ------------------------------- #

def graph_res_block_kernel(x_ref, adjk_ref, w1_ref, s1_ref, w2_ref, s2_ref,
                           out_ref):
    x = x_ref[...]                                   # (tb, VD) f32
    adjk = adjk_ref[...]                             # (VD, VD) bf16 = kron(adj^T, I_D)

    def graph_conv_block(h_in, w_ref, s_ref):
        # Per-vertex Linear + folded eval-mode BN, block-diagonally packed:
        # one lane-dense (tb, VD) @ (VD, VD) MXU matmul (f32 accumulation).
        h = jnp.dot(h_in.astype(jnp.bfloat16), w_ref[...],
                    preferred_element_type=jnp.float32)
        # Graph propagation: h @ kron(adj^T, I_D) — a second lane-dense matmul,
        # no in-kernel transpose / relayout of the activation tile.
        g = jnp.dot(h.astype(jnp.bfloat16), adjk,
                    preferred_element_type=jnp.float32)
        # Shift was pre-propagated through the adjacency in the wrapper:
        # add once in f32, then ReLU.
        return jnp.maximum(g + s_ref[...], 0.0)

    h1 = graph_conv_block(x, w1_ref, s1_ref)
    h2 = graph_conv_block(h1, w2_ref, s2_ref)
    out_ref[...] = (h2 + x).astype(out_ref.dtype)    # residual in f32


# ------------------------------- wrapper ------------------------------- #

def _pick_batch_tile(B, VD, param_bytes):
    """Largest multiple-of-8 batch tile dividing B that fits a VMEM budget,
    preferring >= 2 grid steps (v7x second TensorCore)."""
    try:
        vmem_cap = pltpu.get_tpu_info().vmem_capacity_bytes
    except Exception:
        vmem_cap = 64 * 1024 * 1024
    # Stay well under the default scoped VMEM limit on every generation
    # (16 MiB on v5e, 32 MiB on v6e/v7x).
    budget = min(vmem_cap // 4, 12 * 1024 * 1024)
    budget -= 2 * param_bytes                       # resident (double-buffered) params

    def act_bytes(tb):                              # in + out tiles, double-buffered, f32
        return 2 * 2 * tb * VD * 4

    cands = [t for t in range(8, B + 1, 8)
             if B % t == 0 and act_bytes(t) <= budget]
    if not cands:
        return B                                    # tiny/odd batch: single step (block == array)
    two_step = [t for t in cands if B // t >= 2]
    return max(two_step) if two_step else max(cands)


def graph_res_block(feat, adjk, w_bd1, s1, w_bd2, s2):
    """feat: (B, V, D) f32.  adjk: (V*D, V*D) bf16 = kron(adj^T, I_D).
    w_bd*: (V*D, V*D) bf16 block-diagonal folded (Linear+BN) weights.
    s*: (1, V*D) f32 adjacency-propagated shifts.  Returns (B, V, D) f32."""
    B, V, D = feat.shape
    VD = V * D

    # Free row-major reshape (bitcast) — activations never transposed in HBM.
    feat2d = feat.reshape(B, VD)

    param_bytes = (adjk.size + w_bd1.size + w_bd2.size) * 2 \
        + (s1.size + s2.size) * 4
    tb = _pick_batch_tile(B, VD, param_bytes)
    grid = (B // tb,)

    act_spec = pl.BlockSpec((tb, VD), lambda i: (i, 0))
    # Grid-invariant blocks (resident across the batch loop).
    # TODO(synk): for large V*D parameters on v7x (64 MiB VMEM), mark these with
    #             pipeline_mode=pl.Buffered(1) to halve their resident footprint.
    const2d = lambda shape: pl.BlockSpec(shape, lambda i: (0, 0))

    flops = 4 * (2 * B * VD * VD)                   # 2 blocks x 2 matmuls each
    bytes_accessed = (2 * B * VD * 4                # activations in + out (f32)
                      + 3 * VD * VD * 2             # adjk + two weight matrices (bf16)
                      + 2 * VD * 4)                 # two shifts (f32)

    out2d = pl.pallas_call(
        graph_res_block_kernel,
        out_shape=jax.ShapeDtypeStruct((B, VD), feat.dtype),
        grid_spec=pltpu.PrefetchScalarGridSpec(
            num_scalar_prefetch=0,
            grid=grid,
            in_specs=[
                act_spec,                 # activations (batch-tiled)
                const2d((VD, VD)),        # adjk
                const2d((VD, VD)),        # w_bd1
                const2d((1, VD)),         # s1
                const2d((VD, VD)),        # w_bd2
                const2d((1, VD)),         # s2
            ],
            out_specs=act_spec,
        ),
        compiler_params=pltpu.CompilerParams(
            dimension_semantics=("parallel",)),
        cost_estimate=pl.CostEstimate(flops=flops, transcendentals=0,
                                      bytes_accessed=bytes_accessed),
    )(feat2d, adjk, w_bd1, s1, w_bd2, s2)

    return out2d.reshape(B, V, D)


# ------------------------- parameter construction ------------------------- #

def make_block_params(key, V, D):
    """Raw per-vertex Linear(D, D) + BatchNorm1d(D) parameters (PyTorch layout)."""
    k_w, k_b, k_g, k_be, k_m, k_v = jax.random.split(key, 6)
    bound = 1.0 / jnp.sqrt(jnp.float32(D))
    w = jax.random.uniform(k_w, (V, D, D), jnp.float32, -bound, bound)  # (out, in)
    b = jax.random.uniform(k_b, (V, D), jnp.float32, -bound, bound)
    gamma = 1.0 + 0.1 * jax.random.normal(k_g, (V, D), jnp.float32)
    beta = 0.1 * jax.random.normal(k_be, (V, D), jnp.float32)
    mean = 0.1 * jax.random.normal(k_m, (V, D), jnp.float32)
    var = jnp.abs(1.0 + 0.1 * jax.random.normal(k_v, (V, D), jnp.float32))
    return w, b, gamma, beta, mean, var


def fold_and_pack_params(adj, raw1, raw2, eps=1e-5):
    """Fold eval-mode BN + Linear bias, pack block-diagonal weights, expand the
    adjacency with kron(adj^T, I_D), and propagate the shift through adj.

    Returns (adjk bf16 (VD,VD), w_bd1 bf16 (VD,VD), s1 f32 (1,VD),
             w_bd2 bf16 (VD,VD), s2 f32 (1,VD))."""
    V = adj.shape[0]
    D = raw1[0].shape[-1]
    VD = V * D

    def fold_one(raw):
        w, b, gamma, beta, mean, var = raw
        scale = gamma / jnp.sqrt(var + eps)                   # (V, D_out)
        w_io = jnp.swapaxes(w, 1, 2) * scale[:, None, :]      # (V, D_in, D_out), BN folded
        t = beta + (b - mean) * scale                          # (V, D_out) folded shift
        # Block-diagonal pack: rows index (v, d_in), cols index (u, d_out).
        w_bd = jnp.einsum('vio,vu->viuo', w_io,
                          jnp.eye(V, dtype=w_io.dtype)).reshape(VD, VD)
        # Propagate the shift through the adjacency: adj @ (h + t) = adj@h + adj@t.
        s = (adj @ t).reshape(1, VD).astype(jnp.float32)
        return w_bd.astype(jnp.bfloat16), s

    w_bd1, s1 = fold_one(raw1)
    w_bd2, s2 = fold_one(raw2)
    # kron(adj^T, I_D): g_flat = h_flat @ adjk  <=>  g[b,v,:] = sum_u adj[v,u] h[b,u,:]
    adjk = jnp.kron(adj.T, jnp.eye(D, dtype=jnp.float32)).astype(jnp.bfloat16)
    return adjk, w_bd1, s1, w_bd2, s2


# ----------------------------- references ----------------------------- #

def reference_forward_f32(feat, adj, raw1, raw2, eps=1e-5):
    """Pure-f32 reference in the original module order (Linear -> BN -> bmm -> ReLU)."""
    def block(x, raw):
        w, b, gamma, beta, mean, var = raw
        h = jnp.einsum('bvd,vod->bvo', x, w) + b[None]
        h = (h - mean[None]) * (gamma[None] / jnp.sqrt(var[None] + eps)) + beta[None]
        g = jnp.einsum('vu,bud->bvd', adj, h)
        return jax.nn.relu(g)
    return block(block(feat, raw1), raw2) + feat


def reference_forward_packed_bf16(feat, adjk, w_bd1, s1, w_bd2, s2):
    """Reference using the exact same packing / folding / bf16 rounding points
    as the kernel (updated in lockstep with the shift-propagation change)."""
    B, V, D = feat.shape
    x = feat.reshape(B, V * D)

    def block(h_in, w_bd, s):
        h = jnp.dot(h_in.astype(jnp.bfloat16), w_bd,
                    preferred_element_type=jnp.float32)
        g = jnp.dot(h.astype(jnp.bfloat16), adjk,
                    preferred_element_type=jnp.float32)
        return jax.nn.relu(g + s)

    h2 = block(block(x, w_bd1, s1), w_bd2, s2)
    return (h2 + x).reshape(B, V, D)


# --------------------------------- main --------------------------------- #

if __name__ == "__main__":
    # vertex_num = adj.shape[0] = 8, dim = 32  ->  V*D = 256 (lane-dense).
    # B = 16 keeps >= 2 grid steps so a v7x second TensorCore is not idle.
    B, V, D = 16, 8, 32

    key = jax.random.PRNGKey(0)
    k_feat, k_adj, k_p1, k_p2 = jax.random.split(key, 4)

    feat = jax.random.normal(k_feat, (B, V, D), jnp.float32)

    # Deterministic "adjacency": row-normalized (I + random non-negative).
    raw_adj = jnp.abs(jax.random.normal(k_adj, (V, V), jnp.float32)) + jnp.eye(V)
    adj = raw_adj / jnp.sum(raw_adj, axis=1, keepdims=True)

    raw1 = make_block_params(k_p1, V, D)
    raw2 = make_block_params(k_p2, V, D)
    adjk, w_bd1, s1, w_bd2, s2 = fold_and_pack_params(adj, raw1, raw2)

    run = jax.jit(graph_res_block)
    out = jax.block_until_ready(run(feat, adjk, w_bd1, s1, w_bd2, s2))
    assert out.shape == (B, V, D)

    # Tight check: reference with identical packing + bf16 MXU-operand rounding.
    ref_tight = reference_forward_packed_bf16(feat, adjk, w_bd1, s1, w_bd2, s2)
    assert jnp.allclose(out, ref_tight, rtol=1e-2, atol=1e-2), \
        "mismatch vs packed/bf16 reference"

    # Sanity check vs. the pure-f32 module-order reference (bf16 MXU operands
    # and BN folding give small, bounded deviations).
    ref_f32 = reference_forward_f32(feat, adj, raw1, raw2)
    assert jnp.allclose(out, ref_f32, rtol=1e-1, atol=1e-1), \
        "mismatch vs f32 module reference"

    print("KERNEL_OK")
</pallas_src>

<mosaic_0001>
module attributes {stable_mosaic.version = 11 : i64} {
  func.func @graph_res_block_kernel(%arg0: i32, %arg1: memref<8x256xf32, #tpu.memory_space<vmem>>, %arg2: memref<256x256xbf16, #tpu.memory_space<vmem>>, %arg3: memref<256x256xbf16, #tpu.memory_space<vmem>>, %arg4: memref<1x256xf32, #tpu.memory_space<vmem>>, %arg5: memref<256x256xbf16, #tpu.memory_space<vmem>>, %arg6: memref<1x256xf32, #tpu.memory_space<vmem>>, %arg7: memref<8x256xf32, #tpu.memory_space<vmem>>) attributes {dimension_semantics = [#tpu.dimension_semantics<parallel>], iteration_bounds = array<i64: 2>, scalar_prefetch = 0 : i64, scratch_operands = 0 : i64, tpu.core_type = #tpu.core_type<tc>, window_params = [{transform_indices = @transform_0, window_bounds = array<i64: 8, 256>}, {pipeline_mode = #tpu.pipeline_mode<synchronous>, transform_indices = @transform_1, window_bounds = array<i64: 256, 256>}, {pipeline_mode = #tpu.pipeline_mode<synchronous>, transform_indices = @transform_2, window_bounds = array<i64: 256, 256>}, {pipeline_mode = #tpu.pipeline_mode<synchronous>, transform_indices = @transform_3, window_bounds = array<i64: 1, 256>}, {pipeline_mode = #tpu.pipeline_mode<synchronous>, transform_indices = @transform_4, window_bounds = array<i64: 256, 256>}, {pipeline_mode = #tpu.pipeline_mode<synchronous>, transform_indices = @transform_5, window_bounds = array<i64: 1, 256>}, {transform_indices = @transform_6, window_bounds = array<i64: 8, 256>}]} {
    %c0 = arith.constant 0 : index
    %c0_0 = arith.constant 0 : index
    %0 = vector.load %arg1[%c0, %c0_0] : memref<8x256xf32, #tpu.memory_space<vmem>>, vector<8x256xf32>
    %c0_1 = arith.constant 0 : index
    %c0_2 = arith.constant 0 : index
    %1 = vector.load %arg2[%c0_1, %c0_2] : memref<256x256xbf16, #tpu.memory_space<vmem>>, vector<256x256xbf16>
    %2 = arith.truncf %0 : vector<8x256xf32> to vector<8x256xbf16>
    %c0_3 = arith.constant 0 : index
    %c0_4 = arith.constant 0 : index
    %3 = vector.load %arg3[%c0_3, %c0_4] : memref<256x256xbf16, #tpu.memory_space<vmem>>, vector<256x256xbf16>
    %cst = arith.constant dense<0.000000e+00> : vector<8x256xf32>
    %4 = tpu.matmul %2, %3, %cst {dimension_numbers = #tpu.dot_dimension_numbers<[1], [0], [0], [1], [0, 0, 1, 1], [], []>} : vector<8x256xbf16>, vector<256x256xbf16>, vector<8x256xf32> -> vector<8x256xf32>
    %5 = arith.truncf %4 : vector<8x256xf32> to vector<8x256xbf16>
    %cst_5 = arith.constant dense<0.000000e+00> : vector<8x256xf32>
    %6 = tpu.matmul %5, %1, %cst_5 {dimension_numbers = #tpu.dot_dimension_numbers<[1], [0], [0], [1], [0, 0, 1, 1], [], []>} : vector<8x256xbf16>, vector<256x256xbf16>, vector<8x256xf32> -> vector<8x256xf32>
    %c0_6 = arith.constant 0 : index
    %c0_7 = arith.constant 0 : index
    %7 = vector.load %arg4[%c0_6, %c0_7] : memref<1x256xf32, #tpu.memory_space<vmem>>, vector<1x256xf32>
    %8 = vector.broadcast %7 : vector<1x256xf32> to vector<8x256xf32>
    %9 = arith.addf %6, %8 : vector<8x256xf32>
    %cst_8 = arith.constant 0.000000e+00 : f32
    %10 = vector.broadcast %cst_8 : f32 to vector<8x256xf32>
    %11 = arith.maximumf %9, %10 : vector<8x256xf32>
    %12 = arith.truncf %11 : vector<8x256xf32> to vector<8x256xbf16>
    %c0_9 = arith.constant 0 : index
    %c0_10 = arith.constant 0 : index
    %13 = vector.load %arg5[%c0_9, %c0_10] : memref<256x256xbf16, #tpu.memory_space<vmem>>, vector<256x256xbf16>
    %cst_11 = arith.constant dense<0.000000e+00> : vector<8x256xf32>
    %14 = tpu.matmul %12, %13, %cst_11 {dimension_numbers = #tpu.dot_dimension_numbers<[1], [0], [0], [1], [0, 0, 1, 1], [], []>} : vector<8x256xbf16>, vector<256x256xbf16>, vector<8x256xf32> -> vector<8x256xf32>
    %15 = arith.truncf %14 : vector<8x256xf32> to vector<8x256xbf16>
    %cst_12 = arith.constant dense<0.000000e+00> : vector<8x256xf32>
    %16 = tpu.matmul %15, %1, %cst_12 {dimension_numbers = #tpu.dot_dimension_numbers<[1], [0], [0], [1], [0, 0, 1, 1], [], []>} : vector<8x256xbf16>, vector<256x256xbf16>, vector<8x256xf32> -> vector<8x256xf32>
    %c0_13 = arith.constant 0 : index
    %c0_14 = arith.constant 0 : index
    %17 = vector.load %arg6[%c0_13, %c0_14] : memref<1x256xf32, #tpu.memory_space<vmem>>, vector<1x256xf32>
    %18 = vector.broadcast %17 : vector<1x256xf32> to vector<8x256xf32>
    %19 = arith.addf %16, %18 : vector<8x256xf32>
    %cst_15 = arith.constant 0.000000e+00 : f32
    %20 = vector.broadcast %cst_15 : f32 to vector<8x256xf32>
    %21 = arith.maximumf %19, %20 : vector<8x256xf32>
    %22 = arith.addf %21, %0 : vector<8x256xf32>
    %c0_16 = arith.constant 0 : index
    %c0_17 = arith.constant 0 : index
    %23 = vector.load %arg7[%c0_16, %c0_17] : memref<8x256xf32, #tpu.memory_space<vmem>>, vector<8x256xf32>
    tpu.vector_store %arg7[%c0_16, %c0_17], %22 {strides = array<i32>} : memref<8x256xf32, #tpu.memory_space<vmem>>, vector<8x256xf32>,
    return
  }
  func.func @transform_0(%arg0: i32) -> (i32, i32) {
    %c0_i32 = arith.constant 0 : i32
    %c0_i32_0 = arith.constant 0 : i32
    return %arg0, %c0_i32 : i32, i32
  }
  func.func @transform_1(%arg0: i32) -> (i32, i32) {
    %c0_i32 = arith.constant 0 : i32
    %c0_i32_0 = arith.constant 0 : i32
    %c0_i32_1 = arith.constant 0 : i32
    return %c0_i32, %c0_i32_0 : i32, i32
  }
  func.func @transform_2(%arg0: i32) -> (i32, i32) {
    %c0_i32 = arith.constant 0 : i32
    %c0_i32_0 = arith.constant 0 : i32
    %c0_i32_1 = arith.constant 0 : i32
    return %c0_i32, %c0_i32_0 : i32, i32
  }
  func.func @transform_3(%arg0: i32) -> (i32, i32) {
    %c0_i32 = arith.constant 0 : i32
    %c0_i32_0 = arith.constant 0 : i32
    %c0_i32_1 = arith.constant 0 : i32
    return %c0_i32, %c0_i32_0 : i32, i32
  }
  func.func @transform_4(%arg0: i32) -> (i32, i32) {
    %c0_i32 = arith.constant 0 : i32
    %c0_i32_0 = arith.constant 0 : i32
    %c0_i32_1 = arith.constant 0 : i32
    return %c0_i32, %c0_i32_0 : i32, i32
  }
  func.func @transform_5(%arg0: i32) -> (i32, i32) {
    %c0_i32 = arith.constant 0 : i32
    %c0_i32_0 = arith.constant 0 : i32
    %c0_i32_1 = arith.constant 0 : i32
    return %c0_i32, %c0_i32_0 : i32, i32
  }
  func.func @transform_6(%arg0: i32) -> (i32, i32) {
    %c0_i32 = arith.constant 0 : i32
    %c0_i32_0 = arith.constant 0 : i32
    return %arg0, %c0_i32 : i32, i32
  }
}

</mosaic_0001>

<bundles_post_ra>
// kernel: graph_res_block.1
= control target key start
LH: loop header
LB: loop body
LE: loop exit
PB: predicated region body
PF: predicated region fallthrough
CT: control target
= control target key end

     0   :  { %11 = vsyncpa [#allocation3], 0  ;;  %s1886_s0 = inlined_call_operand.vmem [shape: f32[16,256], index: 0, kind: input, shape index: {}]   ;;  %s1887_s1 = inlined_call_operand.hbm [shape: bf16[256,256], index: 1, kind: input, shape index: {}]   ;;  %s1888_s2 = inlined_call_operand.hbm [shape: bf16[256,256], index: 2, kind: input, shape index: {}]   ;;  %s1889_s3 = inlined_call_operand.vmem [shape: f32[1,256], index: 3, kind: input, shape index: {}]   ;;  %s1890_s4 = inlined_call_operand.hbm [shape: bf16[256,256], index: 4, kind: input, shape index: {}]   ;;  %s1891_s5 = inlined_call_operand.vmem [shape: f32[1,256], index: 5, kind: input, shape index: {}]   ;;  %s1892_s6 = inlined_call_operand.vmem [shape: f32[16,256], index: 6, kind: output, shape index: {}]  }
   0x1   :  { %12 = vsyncpa [#allocation5], 0  ;;  %s1604_s21 = smov 0  }
   0x2 LB: > { %s1610_s22 = sadd.s32 4294967295, %s1562_s21   ;;  %p1166_p0 = scmp.ge.s32.totalorder %s1562_s21, 1  ;;  %s1562_s21 = sphi %s1604_s21, %s18_s21  }
   0x3   : > { %p180_p1 = scmp.lt.s32.totalorder %s1562_s21, 3  ;;  %p1893_p2 = scmp.eq.s32.totalorder %s1610_s22, 0 }
   0x4   : > { %s1564_s24 = smov [#allocation4]   ;;  %s1565_s26 = smov [#allocation2]  }
   0x5   : > { %p1615_p3 = pnand %p1166_p0, %p180_p1  ;;  %s205_s25 = sshll.u32 %s1564_s24, 4  ;;  %s206_s25 = int_to_ptr.vmem [resolvable:$true] %s205_s25 }
   0x6   : > { %s192_s27 = sshll.u32 %s1565_s26, 4  ;;  %s1566_s29 = smov [#allocation6]   ;;  %s1627_s27 = int_to_ptr.vmem [resolvable:$true] %s192_s27 }
   0x7   : > { %s1895_s23 = scalar_select %p1615_p3, 1, 0 }
   0x8   : > { %p1291_p4 = pneg %p1615_p3  ;;  %s221_s30 = sshll.u32 %s1566_s29, 4  ;;  %s1629_s30 = int_to_ptr.vmem [resolvable:$true] %s221_s30 }
   0x9   : > { %s1464_s9 = scalar_lea.hbm %s1888_s2, 4096 }
   0xa   : > { %p1623_p5 = pnand %p1893_p2, %p1291_p4  ;;  %p1465_p6 = scmp.ne.s32.totalorder %s1888_s2, %s1464_s9 }
   0xb   : > { %p1471_p10 = scmp.lt.u32.totalorder %s1464_s9, %s1888_s2 }
   0xc   : > { %p1639_p7 = pneg %p1623_p5 }
   0xe   : > { %p1467_p8 = pnand %p1639_p7, %p1465_p6 }
  0x10   : > { %p1468_p9 = pneg %p1467_p8 }
  0x12   : > { %p1473_p11 = pnand %p1471_p10, %p1468_p9 }
  0x14   : > { %1476 = shalt.err (!%p1473_p11)
}
  0x15   : > { %s1477_s15 = scalar_lea.vmem %s206_s25, 4096  ;;  %p1485_p1 = scmp.lt.s32.totalorder %s206_s25, %s206_s25 }
  0x16   : > { %p1478_p12 = scmp.ne.s32.totalorder %s206_s25, %s1477_s15  ;;  %p1486_p4 = scmp.lt.s32.totalorder %s1477_s15, %s1477_s15 }
  0x18   : > { %p1480_p13 = pnand %p1478_p12, %p1639_p7  ;;  %p1487_p2 = por %p1486_p4, %p1485_p1 }
  0x1a   : > { %p1481_p0 = pneg %p1480_p13 }
  0x1c   : > { %p1488_p3 = pnand %p1487_p2, %p1481_p0 }
  0x1e   : > { %1491 = shalt.err (!%p1488_p3)
}
  0x1f   : > { %s1567_s16 = smov 128   ;;  %s1568_s17 = smov 8  }
  0x20   : > { %1297 = dma.hbm_to_vmem [thread:$0]  (!%p1623_p5), %s1888_s2, 4096, %s206_s25, [#allocation5], %s1567_s16, %s1567_s16, %s1568_s17  }
  0x21   : > { %s1492_s26 = scalar_lea.hbm %s1887_s1, 4096 }
  0x22   : > { %p1493_p2 = scmp.ne.s32.totalorder %s1887_s1, %s1492_s26  ;;  %p1499_p8 = scmp.lt.u32.totalorder %s1492_s26, %s1887_s1 }
  0x24   : > { %p1495_p3 = pnand %p1493_p2, %p1639_p7 }
  0x26   : > { %p1496_p6 = pneg %p1495_p3 }
  0x28   : > { %p1501_p9 = pnand %p1499_p8, %p1496_p6 }
  0x2a   : > { %1504 = shalt.err (!%p1501_p9)
}
  0x2b   : > { %s1505_s25 = scalar_lea.vmem %s1627_s27, 4096  ;;  %p1513_p13 = scmp.lt.s32.totalorder %s1627_s27, %s1627_s27 }
  0x2c   : > { %p1506_p10 = scmp.ne.s32.totalorder %s1627_s27, %s1505_s25  ;;  %p1514_p0 = scmp.lt.s32.totalorder %s1505_s25, %s1505_s25 }
  0x2e   : > { %p1508_p11 = pnand %p1506_p10, %p1639_p7  ;;  %p1515_p1 = por %p1514_p0, %p1513_p13 }
  0x30   : > { %p1509_p12 = pneg %p1508_p11 }
  0x32   : > { %p1516_p4 = pnand %p1515_p1, %p1509_p12 }
  0x34   : > { %1519 = shalt.err (!%p1516_p4)
}
  0x35   : > { %1294 = dma.hbm_to_vmem [thread:$0]  (!%p1623_p5), %s1887_s1, 4096, %s1627_s27, [#allocation3], %s1567_s16, %s1567_s16, %s1568_s17  }
  0x36   : > { %s1520_s15 = scalar_lea.hbm %s1890_s4, 4096 }
  0x37   : > { %p1521_p2 = scmp.ne.s32.totalorder %s1890_s4, %s1520_s15  ;;  %p1527_p8 = scmp.lt.u32.totalorder %s1520_s15, %s1890_s4 }
  0x39   : > { %p1523_p3 = pnand %p1521_p2, %p1639_p7 }
  0x3b   : > { %p1524_p6 = pneg %p1523_p3 }
  0x3d   : > { %p1529_p9 = pnand %p1527_p8, %p1524_p6 }
  0x3f   : > { %1532 = shalt.err (!%p1529_p9)
}
  0x40   : > { %s1533_s27 = scalar_lea.vmem %s1629_s30, 4096  ;;  %p1541_p13 = scmp.lt.s32.totalorder %s1629_s30, %s1629_s30 }
  0x41   : > { %p1534_p10 = scmp.ne.s32.totalorder %s1629_s30, %s1533_s27  ;;  %p1542_p0 = scmp.lt.s32.totalorder %s1533_s27, %s1533_s27 }
  0x43   : > { %p1536_p11 = pnand %p1534_p10, %p1639_p7  ;;  %p1543_p1 = por %p1542_p0, %p1541_p13 }
  0x45   : > { %p1537_p12 = pneg %p1536_p11 }
  0x47   : > { %p1544_p4 = pnand %p1543_p1, %p1537_p12 }
  0x49   : > { %1547 = shalt.err (!%p1544_p4)
}
  0x4a   : > { %1300 = dma.hbm_to_vmem [thread:$0]  (!%p1623_p5), %s1890_s4, 4096, %s1629_s30, [#allocation5], %s1567_s16, %s1567_s16, %s1568_s17  }
  0x4b   : > { %p1898_p2 = scmp.ne.s32.totalorder %s1895_s23, 0 }
  0x4c   : > { %p1899_p7 = scmp.eq.s32.totalorder (!%p1898_p2), %s1610_s22, 0 }
  0x4d   : > { %248 = sbr.rel (%p1898_p2) target bundleno = 1026 (0x402), region = 44 }
  0x54   : > { %1553 = dma.done.wait (%p1899_p7), [#allocation3], 4096   ;;  %p1900_p3 = pmov %p1899_p7 }
  0x56   : > { %1555 = vsyncadd (%p1900_p3), [#allocation3], 4294963200  ;;  %p1901_p6 = pmov %p1900_p3 }
  0x57   : > { %p1902_p8 = pmov %p1900_p3 }
  0x58   : > { %1557 = dma.done.wait (%p1901_p6), [#allocation5], 8192  }
  0x59   : > { %1559 = vsyncadd (%p1902_p8), [#allocation5], 4294959104  ;;  %v1320_v0 = vld [vmem:[#allocation4 + $0x4] ss:$8 sps:$4 sm:$0xff]   ;;  %v1322_v1 = vld [vmem:[#allocation4] ss:$8 sps:$4 sm:$0xff]  }
  0x5a   : > { %524 = vmatprep.subr.bf16.mxu0 %v1320_v0  ;;  %v1323_v2 = vld [vmem:[#allocation4 + $0x14] ss:$8 sps:$4 sm:$0xff]   ;;  %v1325_v3 = vld [vmem:[#allocation4 + $0x10] ss:$8 sps:$4 sm:$0xff]   ;;  %v1326_v4 = vld [vmem:[#allocation4 + $0x24] ss:$8 sps:$4 sm:$0xff]  }
  0x5b   : > { %525 = vmatpush1.bf16.msra.mxu0 %v1322_v1  ;;  %v1328_v5 = vld [vmem:[#allocation4 + $0x20] ss:$8 sps:$4 sm:$0xff]   ;;  %p286_p5 = scmp.lt.s32.totalorder %s1610_s22, 1  ;;  %v1329_v6 = vld [vmem:[#allocation4 + $0x34] ss:$8 sps:$4 sm:$0xff]  }
  0x5c   : > { %526 = vmatprep.subr.bf16.mxu0 %v1323_v2  ;;  %v1331_v7 = vld [vmem:[#allocation4 + $0x30] ss:$8 sps:$4 sm:$0xff]   ;;  %v1332_v8 = vld [vmem:[#allocation4 + $0x44] ss:$8 sps:$4 sm:$0xff]   ;;  %v1334_v9 = vld [vmem:[#allocation4 + $0x40] ss:$8 sps:$4 sm:$0xff]  }
  0x5d   : > { %s1904_s22 = smov (!%p286_p5, %s1610_s22), 1  ;;  %v1335_v10 = vld [vmem:[#allocation4 + $0x54] ss:$8 sps:$4 sm:$0xff]   ;;  %v1337_v11 = vld [vmem:[#allocation4 + $0x50] ss:$8 sps:$4 sm:$0xff]  }
  0x5e   : > { %s1277_s23 = sshll.u32 %s1904_s22, 4  ;;  %v1338_v12 = vld [vmem:[#allocation4 + $0x64] ss:$8 sps:$4 sm:$0xff]   ;;  %v1340_v13 = vld [vmem:[#allocation4 + $0x60] ss:$8 sps:$4 sm:$0xff]  }
  0x5f   : > { %527 = vmatpush1.bf16.msra.mxu0 %v1325_v3  ;;  %s1730_s12 = scalar_lea.vmem %s1886_s0, %s1277_s23  ;;  %v1737_v16 = vld [vmem:[#allocation2 + $0x4] ss:$8 sps:$4 sm:$0xff]   ;;  %v1739_v17 = vld [vmem:[#allocation2] ss:$8 sps:$4 sm:$0xff]   ;;  %v1341_v18 = vld [vmem:[#allocation4 + $0x74] ss:$8 sps:$4 sm:$0xff]   ;;  %s295_s10 = scalar_lea.vmem %s1892_s6, %s1277_s23 }
  0x60   : > { %528 = vmatprep.subr.bf16.mxu0 %v1326_v4  ;;  %v1733_v14 = vld [vmem:[%s1730_s12 + $0x8] sm:$0xff]  ;;  %v1741_v19 = vld [vmem:[#allocation2 + $0x14] ss:$8 sps:$4 sm:$0xff]   ;;  %v1343_v20 = vld [vmem:[#allocation4 + $0x70] ss:$8 sps:$4 sm:$0xff]   ;;  %739 = vmatprep.subr.bf16.mxu1 %v1737_v16 }
  0x61   : > { %v331_v15 = vpack.c.bf16 %v1733_v14, %v1733_v14  ;;  %740 = vmatpush1.bf16.msra.mxu1 %v1739_v17  ;;  %v1745_v21 = vld [vmem:[#allocation2 + $0x10] ss:$8 sps:$4 sm:$0xff]   ;;  %v1748_v22 = vld [vmem:[#allocation2 + $0x24] ss:$8 sps:$4 sm:$0xff]   ;;  %v1346_v24 = vld [vmem:[#allocation4 + $0x80] ss:$8 sps:$4 sm:$0xff]  }
  0x62   : > { %741 = vmatprep.subr.bf16.mxu1 %v1741_v19  ;;  %v1344_v23 = vld [vmem:[#allocation4 + $0x84] ss:$8 sps:$4 sm:$0xff]   ;;  %v1751_v25 = vld [vmem:[#allocation2 + $0x20] ss:$8 sps:$4 sm:$0xff]   ;;  %v1754_v26 = vld [vmem:[#allocation2 + $0x34] ss:$8 sps:$4 sm:$0xff]  }
  0x63   : > { %529 = vmatpush1.bf16.msra.mxu0 %v1328_v5  ;;  %556 = vmatprep.mubr.bf16.mxu0 %v331_v15  ;;  %v1347_v27 = vld [vmem:[#allocation4 + $0x94] ss:$8 sps:$4 sm:$0xff]   ;;  %v1349_v28 = vld [vmem:[#allocation4 + $0x90] ss:$8 sps:$4 sm:$0xff]   ;;  %v1760_v30 = vld [vmem:[#allocation2 + $0x44] ss:$8 sps:$4 sm:$0xff]  }
  0x64   : > { %530 = vmatprep.subr.bf16.mxu0 %v1329_v6  ;;  %v1757_v29 = vld [vmem:[#allocation2 + $0x30] ss:$8 sps:$4 sm:$0xff]   ;;  %v1350_v31 = vld [vmem:[#allocation4 + $0xa4] ss:$8 sps:$4 sm:$0xff]   ;;  %v1352_v32 = vld [vmem:[#allocation4 + $0xa0] ss:$8 sps:$4 sm:$0xff]  }
  0x65   : > { %742 = vmatpush1.bf16.msra.mxu1 %v1745_v21  ;;  %v1763_v33 = vld [vmem:[#allocation2 + $0x40] ss:$8 sps:$4 sm:$0xff]   ;;  %v1766_v34 = vld [vmem:[#allocation2 + $0x54] ss:$8 sps:$4 sm:$0xff]   ;;  %v1355_v36 = vld [vmem:[#allocation4 + $0xb0] ss:$8 sps:$4 sm:$0xff]  }
  0x66   : > { %743 = vmatprep.subr.bf16.mxu1 %v1748_v22  ;;  %v1353_v35 = vld [vmem:[#allocation4 + $0xb4] ss:$8 sps:$4 sm:$0xff]   ;;  %v1768_v37 = vld [vmem:[#allocation2 + $0x50] ss:$8 sps:$4 sm:$0xff]   ;;  %v1770_v38 = vld [vmem:[#allocation2 + $0x64] ss:$8 sps:$4 sm:$0xff]  }
  0x67   : > { %531 = vmatpush1.bf16.msra.mxu0 %v1331_v7  ;;  %v1356_v39 = vld [vmem:[#allocation4 + $0xc4] ss:$8 sps:$4 sm:$0xff]   ;;  %v1774_v40 = vld [vmem:[#allocation2 + $0x60] ss:$8 sps:$4 sm:$0xff]   ;;  %v1776_v42 = vld [vmem:[#allocation2 + $0x74] ss:$8 sps:$4 sm:$0xff]  }
  0x68   : > { %532 = vmatprep.subr.bf16.mxu0 %v1332_v8  ;;  %v1358_v41 = vld [vmem:[#allocation4 + $0xc0] ss:$8 sps:$4 sm:$0xff]   ;;  %v1359_v43 = vld [vmem:[#allocation4 + $0xd4] ss:$8 sps:$4 sm:$0xff]   ;;  %v1780_v44 = vld [vmem:[#allocation2 + $0x70] ss:$8 sps:$4 sm:$0xff]  }
  0x69   : > { %744 = vmatpush1.bf16.msra.mxu1 %v1751_v25  ;;  %v1361_v45 = vld [vmem:[#allocation4 + $0xd0] ss:$8 sps:$4 sm:$0xff]   ;;  %v1782_v46 = vld [vmem:[#allocation2 + $0x84] ss:$8 sps:$4 sm:$0xff]   ;;  %v1787_v48 = vld [vmem:[#allocation2 + $0x80] ss:$8 sps:$4 sm:$0xff]  }
  0x6a   : > { %745 = vmatprep.subr.bf16.mxu1 %v1754_v26  ;;  %v1362_v47 = vld [vmem:[#allocation4 + $0xe4] ss:$8 sps:$4 sm:$0xff]   ;;  %v1364_v49 = vld [vmem:[#allocation4 + $0xe0] ss:$8 sps:$4 sm:$0xff]   ;;  %v1790_v50 = vld [vmem:[#allocation2 + $0x94] ss:$8 sps:$4 sm:$0xff]  }
  0x6b   : > { %533 = vmatpush1.bf16.msra.mxu0 %v1334_v9  ;;  %v1365_v51 = vld [vmem:[#allocation4 + $0xf4] ss:$8 sps:$4 sm:$0xff]   ;;  %v1793_v52 = vld [vmem:[#allocation2 + $0x90] ss:$8 sps:$4 sm:$0xff]   ;;  %v1796_v54 = vld [vmem:[%s1730_s12] sm:$0xff] }
  0x6c   : > { %534 = vmatprep.subr.bf16.mxu0 %v1335_v10  ;;  %v1367_v53 = vld [vmem:[#allocation4 + $0xf0] ss:$8 sps:$4 sm:$0xff]   ;;  %v1799_v55 = vld [vmem:[#allocation2 + $0xa4] ss:$8 sps:$4 sm:$0xff]   ;;  %v330_v56 = vpack.c.bf16 %v1796_v54, %v1796_v54  ;;  %v1804_v57 = vld [vmem:[#allocation2 + $0xa0] ss:$8 sps:$4 sm:$0xff]  }
  0x6d   : > { %746 = vmatpush1.bf16.msra.mxu1 %v1757_v29  ;;  %v1807_v58 = vld [vmem:[#allocation2 + $0xb4] ss:$8 sps:$4 sm:$0xff]   ;;  %v1810_v59 = vld [vmem:[#allocation2 + $0xb0] ss:$8 sps:$4 sm:$0xff]   ;;  %v1813_v60 = vld [vmem:[#allocation2 + $0xc4] ss:$8 sps:$4 sm:$0xff]  }
  0x6e   : > { %747 = vmatprep.subr.bf16.mxu1 %v1760_v30  ;;  %v1816_v61 = vld [vmem:[#allocation2 + $0xc0] ss:$8 sps:$4 sm:$0xff]   ;;  %v1819_v62 = vld [vmem:[#allocation2 + $0xd4] ss:$8 sps:$4 sm:$0xff]   ;;  %v1822_v63 = vld [vmem:[#allocation2 + $0xd0] ss:$8 sps:$4 sm:$0xff]  }
  0x6f   : > { %535 = vmatpush1.bf16.msra.mxu0 %v1337_v11  ;;  %v1825_v0 = vld [vmem:[#allocation2 + $0xe4] ss:$8 sps:$4 sm:$0xff]   ;;  %v1828_v1 = vld [vmem:[#allocation2 + $0xe0] ss:$8 sps:$4 sm:$0xff]   ;;  %v1832_v2 = vld [vmem:[#allocation2 + $0xf4] ss:$8 sps:$4 sm:$0xff]  }
  0x70   : > { %536 = vmatprep.subr.bf16.mxu0 %v1338_v12  ;;  %v1834_v3 = vld [vmem:[#allocation2 + $0xf0] ss:$8 sps:$4 sm:$0xff]   ;;  %v1416_v4 = vld [vmem:[#allocation6] ss:$8 sps:$4 sm:$0xff]   ;;  %v1418_v5 = vld [vmem:[#allocation6 + $0x4] ss:$8 sps:$4 sm:$0xff]  }
  0x71   : > { %748 = vmatpush1.bf16.msra.mxu1 %v1763_v33  ;;  %v1421_v6 = vld [vmem:[#allocation6 + $0x14] ss:$8 sps:$4 sm:$0xff]   ;;  %v1419_v7 = vld [vmem:[#allocation6 + $0x10] ss:$8 sps:$4 sm:$0xff]   ;;  %v1424_v8 = vld [vmem:[#allocation6 + $0x24] ss:$8 sps:$4 sm:$0xff]  }
  0x72   : > { %749 = vmatprep.subr.bf16.mxu1 %v1766_v34  ;;  %v1422_v9 = vld [vmem:[#allocation6 + $0x20] ss:$8 sps:$4 sm:$0xff]   ;;  %v1427_v10 = vld [vmem:[#allocation6 + $0x34] ss:$8 sps:$4 sm:$0xff]   ;;  %v1425_v11 = vld [vmem:[#allocation6 + $0x30] ss:$8 sps:$4 sm:$0xff]  }
  0x73   : > { %537 = vmatpush1.bf16.msra.mxu0 %v1340_v13  ;;  %v1430_v12 = vld [vmem:[#allocation6 + $0x44] ss:$8 sps:$4 sm:$0xff]   ;;  %v1428_v13 = vld [vmem:[#allocation6 + $0x40] ss:$8 sps:$4 sm:$0xff]   ;;  %v1433_v15 = vld [vmem:[#allocation6 + $0x54] ss:$8 sps:$4 sm:$0xff]  }
  0x74   : > { %538 = vmatprep.subr.bf16.mxu0 %v1341_v18  ;;  %v1436_v18 = vld [vmem:[#allocation6 + $0x64] ss:$8 sps:$4 sm:$0xff]  }
  0x75   : > { %750 = vmatpush1.bf16.msra.mxu1 %v1768_v37 }
  0x76   : > { %751 = vmatprep.subr.bf16.mxu1 %v1770_v38 }
  0x77   : > { %539 = vmatpush1.bf16.msra.mxu0 %v1343_v20  ;;  %v1434_v20 = vld [vmem:[#allocation6 + $0x60] ss:$8 sps:$4 sm:$0xff]  }
  0x78   : > { %540 = vmatprep.subr.bf16.mxu0 %v1344_v23  ;;  %v1439_v23 = vld [vmem:[#allocation6 + $0x74] ss:$8 sps:$4 sm:$0xff]  }
  0x79   : > { %752 = vmatpush1.bf16.msra.mxu1 %v1774_v40 }
  0x7a   : > { %753 = vmatprep.subr.bf16.mxu1 %v1776_v42 }
  0x7b   : > { %541 = vmatpush1.bf16.msra.mxu0 %v1346_v24  ;;  %v1437_v24 = vld [vmem:[#allocation6 + $0x70] ss:$8 sps:$4 sm:$0xff]  }
  0x7c   : > { %542 = vmatprep.subr.bf16.mxu0 %v1347_v27  ;;  %v1442_v27 = vld [vmem:[#allocation6 + $0x84] ss:$8 sps:$4 sm:$0xff]  }
  0x7d   : > { %754 = vmatpush1.bf16.msra.mxu1 %v1780_v44 }
  0x7e   : > { %755 = vmatprep.subr.bf16.mxu1 %v1782_v46 }
  0x7f   : > { %543 = vmatpush1.bf16.msra.mxu0 %v1349_v28  ;;  %v1440_v28 = vld [vmem:[#allocation6 + $0x80] ss:$8 sps:$4 sm:$0xff]  }
  0x80   : > { %544 = vmatprep.subr.bf16.mxu0 %v1350_v31  ;;  %v1445_v31 = vld [vmem:[#allocation6 + $0x94] ss:$8 sps:$4 sm:$0xff]  }
  0x81   : > { %756 = vmatpush1.bf16.msra.mxu1 %v1787_v48 }
  0x82   : > { %757 = vmatprep.subr.bf16.mxu1 %v1790_v50 }
  0x83   : > { %545 = vmatpush1.bf16.msra.mxu0 %v1352_v32  ;;  %v1443_v32 = vld [vmem:[#allocation6 + $0x90] ss:$8 sps:$4 sm:$0xff]  }
  0x84   : > { %546 = vmatprep.subr.bf16.mxu0 %v1353_v35  ;;  %v1448_v35 = vld [vmem:[#allocation6 + $0xa4] ss:$8 sps:$4 sm:$0xff]  }
  0x85   : > { %758 = vmatpush1.bf16.msra.mxu1 %v1793_v52 }
  0x86   : > { %759 = vmatprep.subr.bf16.mxu1 %v1799_v55 }
  0x87   : > { %547 = vmatpush1.bf16.msra.mxu0 %v1355_v36  ;;  %v1446_v36 = vld [vmem:[#allocation6 + $0xa0] ss:$8 sps:$4 sm:$0xff]  }
  0x88   : > { %548 = vmatprep.subr.bf16.mxu0 %v1356_v39  ;;  %v1451_v39 = vld [vmem:[#allocation6 + $0xb4] ss:$8 sps:$4 sm:$0xff]  }
  0x89   : > { %760 = vmatpush1.bf16.msra.mxu1 %v1804_v57 }
  0x8a   : > { %761 = vmatprep.subr.bf16.mxu1 %v1807_v58 }
  0x8b   : > { %549 = vmatpush1.bf16.msra.mxu0 %v1358_v41  ;;  %v1449_v41 = vld [vmem:[#allocation6 + $0xb0] ss:$8 sps:$4 sm:$0xff]  }
  0x8c   : > { %550 = vmatprep.subr.bf16.mxu0 %v1359_v43  ;;  %v1454_v43 = vld [vmem:[#allocation6 + $0xc4] ss:$8 sps:$4 sm:$0xff]  }
  0x8d   : > { %762 = vmatpush1.bf16.msra.mxu1 %v1810_v59 }
  0x8e   : > { %763 = vmatprep.subr.bf16.mxu1 %v1813_v60 }
  0x8f   : > { %551 = vmatpush1.bf16.msra.mxu0 %v1361_v45  ;;  %v1452_v45 = vld [vmem:[#allocation6 + $0xc0] ss:$8 sps:$4 sm:$0xff]  }
  0x90   : > { %552 = vmatprep.subr.bf16.mxu0 %v1362_v47  ;;  %v1457_v47 = vld [vmem:[#allocation6 + $0xd4] ss:$8 sps:$4 sm:$0xff]  }
  0x91   : > { %764 = vmatpush1.bf16.msra.mxu1 %v1816_v61 }
  0x92   : > { %765 = vmatprep.subr.bf16.mxu1 %v1819_v62 }
  0x93   : > { %553 = vmatpush1.bf16.msra.mxu0 %v1364_v49  ;;  %v1455_v49 = vld [vmem:[#allocation6 + $0xd0] ss:$8 sps:$4 sm:$0xff]  }
  0x94   : > { %554 = vmatprep.subr.bf16.mxu0 %v1365_v51 }
  0x95   : > { %766 = vmatpush1.bf16.msra.mxu1 %v1822_v63 }
  0x96   : > { %767 = vmatprep.subr.bf16.mxu1 %v1825_v0 }
  0x97   : > { %555 = vmatpush1.bf16.msra.mxu0 %v1367_v53 }
  0x98   : > { %976 = vmatprep.subr.bf16.mxu0 %v1418_v5 }
  0x99   : > { %768 = vmatpush1.bf16.msra.mxu1 %v1828_v1 }
  0x9a   : > { %557 = vmatmul.mubr.bf16.vlgmr.msra.gmra.mrb[0].mxu0 %v330_v56  ;;  %769 = vmatprep.subr.bf16.mxu1 %v1832_v2 }
  0x9b   : > { %977 = vmatpush1.bf16.msra.mxu0 %v1416_v4 }
  0x9c   : > { %978 = vmatprep.subr.bf16.mxu0 %v1421_v6 }
  0x9d   : > { %770 = vmatpush1.bf16.msra.mxu1 %v1834_v3 }
  0x9e   : > { %1031 = vmatprep.subr.bf16.mxu1 %v1737_v16  ;;  %v1431_v16 = vld [vmem:[#allocation6 + $0x50] ss:$8 sps:$4 sm:$0xff]  }
  0x9f   : > { %979 = vmatpush1.bf16.msra.mxu0 %v1419_v7 }
  0xa0   : > { %980 = vmatprep.subr.bf16.mxu0 %v1424_v8 }
  0xa3   : > { %981 = vmatpush1.bf16.msra.mxu0 %v1422_v9 }
  0xa4   : > { %982 = vmatprep.subr.bf16.mxu0 %v1427_v10 }
  0xa7   : > { %983 = vmatpush1.bf16.msra.mxu0 %v1425_v11 }
  0xa8   : > { %984 = vmatprep.subr.bf16.mxu0 %v1430_v12 }
  0xab   : > { %985 = vmatpush1.bf16.msra.mxu0 %v1428_v13 }
  0xac   : > { %986 = vmatprep.subr.bf16.mxu0 %v1433_v15 }
  0xaf   : > { %987 = vmatpush1.bf16.msra.mxu0 %v1431_v16 }
  0xb0   : > { %988 = vmatprep.subr.bf16.mxu0 %v1436_v18 }
  0xb3   : > { %989 = vmatpush1.bf16.msra.mxu0 %v1434_v20 }
  0xb4   : > { %990 = vmatprep.subr.bf16.mxu0 %v1439_v23 }
  0xb7   : > { %991 = vmatpush1.bf16.msra.mxu0 %v1437_v24 }
  0xb8   : > { %992 = vmatprep.subr.bf16.mxu0 %v1442_v27 }
  0xbb   : > { %993 = vmatpush1.bf16.msra.mxu0 %v1440_v28 }
  0xbc   : > { %994 = vmatprep.subr.bf16.mxu0 %v1445_v31 }
  0xbf   : > { %995 = vmatpush1.bf16.msra.mxu0 %v1443_v32 }
  0xc0   : > { %996 = vmatprep.subr.bf16.mxu0 %v1448_v35 }
  0xc3   : > { %997 = vmatpush1.bf16.msra.mxu0 %v1446_v36 }
  0xc4   : > { %998 = vmatprep.subr.bf16.mxu0 %v1451_v39 }
  0xc7   : > { %999 = vmatpush1.bf16.msra.mxu0 %v1449_v41 }
  0xc8   : > { %1000 = vmatprep.subr.bf16.mxu0 %v1454_v43 }
  0xcb   : > { %1001 = vmatpush1.bf16.msra.mxu0 %v1452_v45 }
  0xcc   : > { %1002 = vmatprep.subr.bf16.mxu0 %v1457_v47 }
  0xcf   : > { %1003 = vmatpush1.bf16.msra.mxu0 %v1455_v49 }
 0x16d   : > { %v558_v51 = vpop.f32.mrb[0].mxu0 }
 0x16e   : > { %v560_v53 = vpop.f32.mrb[1].mxu0  ;;  %v565_v5 = vpack.c.bf16 %v558_v51, %v558_v51 }
 0x16f   : > { %v562_v56 = vpop.f32.mrb[2].mxu0  ;;  %v566_v4 = vpack.c.bf16 %v560_v53, %v560_v53 }
 0x170   : > { %v563_v6 = vpop.f32.mrb[3].mxu0 }
 0x171   : > { %771 = vmatprep.mubr.bf16.mxu1 %v566_v4 }
 0x172   : > { %772 = vmatmul.mubr.bf16.vlgmr.msra.gmra.mrb[0].mxu1 %v565_v5 }
 0x173   : > { %1032 = vmatpush1.bf16.msra.mxu1 %v1739_v17  ;;  %v1460_v17 = vld [vmem:[#allocation6 + $0xe4] ss:$8 sps:$4 sm:$0xff]  }
 0x174   : > { %1033 = vmatprep.subr.bf16.mxu1 %v1741_v19  ;;  %v1458_v19 = vld [vmem:[#allocation6 + $0xe0] ss:$8 sps:$4 sm:$0xff]   ;;  %1004 = vmatprep.subr.bf16.mxu0 %v1460_v17 }
 0x175   : > { %1005 = vmatpush1.bf16.msra.mxu0 %v1458_v19 }
 0x177   : > { %1034 = vmatpush1.bf16.msra.mxu1 %v1745_v21  ;;  %v1463_v21 = vld [vmem:[#allocation6 + $0xf4] ss:$8 sps:$4 sm:$0xff]  }
 0x178   : > { %1035 = vmatprep.subr.bf16.mxu1 %v1748_v22  ;;  %v1461_v22 = vld [vmem:[#allocation6 + $0xf0] ss:$8 sps:$4 sm:$0xff]   ;;  %1006 = vmatprep.subr.bf16.mxu0 %v1463_v21 }
 0x179   : > { %1007 = vmatpush1.bf16.msra.mxu0 %v1461_v22 }
 0x17b   : > { %1036 = vmatpush1.bf16.msra.mxu1 %v1751_v25  ;;  %v569_v25 = vlaneseq }
 0x17c   : > { %1037 = vmatprep.subr.bf16.mxu1 %v1754_v26 }
 0x17d   : > { %v570_v26 = vshrl.u32 %v569_v25, 7 }
 0x17f   : > { %1038 = vmatpush1.bf16.msra.mxu1 %v1757_v29  ;;  %v571_v29 = vsub.s32 0, %v570_v26 }
 0x180   : > { %1039 = vmatprep.subr.bf16.mxu1 %v1760_v30  ;;  %v567_v30 = vld [vmem:[%s1889_s3] sm:$0x3] }
 0x183   : > { %1040 = vmatpush1.bf16.msra.mxu1 %v1763_v33  ;;  %v575_v33 = vsub.s32 1, %v570_v26 }
 0x184   : > { %1041 = vmatprep.subr.bf16.mxu1 %v1766_v34  ;;  %v572_v34 = vrot.slane %v567_v30, %v571_v29 }
 0x187   : > { %1042 = vmatpush1.bf16.msra.mxu1 %v1768_v37  ;;  %v576_v37 = vrot.slane %v567_v30, %v575_v33 }
 0x188   : > { %1043 = vmatprep.subr.bf16.mxu1 %v1770_v38 }
 0x18b   : > { %1044 = vmatpush1.bf16.msra.mxu1 %v1774_v40 }
 0x18c   : > { %1045 = vmatprep.subr.bf16.mxu1 %v1776_v42 }
 0x18f   : > { %1046 = vmatpush1.bf16.msra.mxu1 %v1780_v44 }
 0x190   : > { %1047 = vmatprep.subr.bf16.mxu1 %v1782_v46 }
 0x193   : > { %1048 = vmatpush1.bf16.msra.mxu1 %v1787_v48 }
 0x194   : > { %1049 = vmatprep.subr.bf16.mxu1 %v1790_v50 }
 0x197   : > { %1050 = vmatpush1.bf16.msra.mxu1 %v1793_v52 }
 0x198   : > { %1051 = vmatprep.subr.bf16.mxu1 %v1799_v55 }
 0x19b   : > { %1052 = vmatpush1.bf16.msra.mxu1 %v1804_v57 }
 0x19c   : > { %1053 = vmatprep.subr.bf16.mxu1 %v1807_v58 }
 0x19f   : > { %1054 = vmatpush1.bf16.msra.mxu1 %v1810_v59 }
 0x1a0   : > { %1055 = vmatprep.subr.bf16.mxu1 %v1813_v60 }
 0x1a3   : > { %1056 = vmatpush1.bf16.msra.mxu1 %v1816_v61 }
 0x1a4   : > { %1057 = vmatprep.subr.bf16.mxu1 %v1819_v62 }
 0x1a7   : > { %1058 = vmatpush1.bf16.msra.mxu1 %v1822_v63 }
 0x1a8   : > { %1059 = vmatprep.subr.bf16.mxu1 %v1825_v0  ;;  %v1019_v0 = vld [vmem:[%s1891_s5] sm:$0x3] }
 0x1ab   : > { %1060 = vmatpush1.bf16.msra.mxu1 %v1828_v1  ;;  %v1024_v1 = vrot.slane %v1019_v0, %v571_v29 }
 0x1ac   : > { %1061 = vmatprep.subr.bf16.mxu1 %v1832_v2  ;;  %v1028_v2 = vrot.slane %v1019_v0, %v575_v33 }
 0x1af   : > { %1062 = vmatpush1.bf16.msra.mxu1 %v1834_v3 }
 0x245   : > { %v773_v38 = vpop.f32.mrb[0].mxu1 }
 0x246   : > { %v774_v40 = vadd.f32 %v773_v38, %v572_v34  ;;  %v775_v42 = vpop.f32.mrb[1].mxu1 }
 0x247   : > { %v776_v44 = vadd.f32 %v775_v42, %v576_v37  ;;  %v777_v46 = vpop.f32.mrb[2].mxu1 }
 0x248   : > { %v780_v48 = vmax.f32 %v774_v40, 0.0  ;;  %v778_v50 = vpop.f32.mrb[3].mxu1 }
 0x249   : > { %v781_v52 = vmax.f32 %v776_v44, 0.0 }
 0x24a   : > { %v782_v57 = vpack.c.bf16 %v780_v48, %v780_v48 }
 0x24b   : > { %v783_v55 = vpack.c.bf16 %v781_v52, %v781_v52 }
 0x24d   : > { %1008 = vmatprep.mubr.bf16.mxu0 %v783_v55 }
 0x24e   : > { %1009 = vmatmul.mubr.bf16.vlgmr.msra.gmra.mrb[4].mxu0 %v782_v57 }
 0x321   : > { %v1010_v58 = vpop.f32.mrb[4].mxu0 }
 0x322   : > { %v1012_v59 = vpop.f32.mrb[5].mxu0  ;;  %v1017_v62 = vpack.c.bf16 %v1010_v58, %v1010_v58 }
 0x323   : > { %v1018_v60 = vpack.c.bf16 %v1012_v59, %v1012_v59  ;;  %v1014_v61 = vpop.f32.mrb[6].mxu0 }
 0x324   : > { %v1015_v63 = vpop.f32.mrb[7].mxu0 }
 0x325   : > { %1063 = vmatprep.mubr.bf16.mxu1 %v1018_v60 }
 0x326   : > { %1064 = vmatmul.mubr.bf16.vlgmr.msra.gmra.mrb[4].mxu1 %v1017_v62 }
 0x3f9   : > { %v1065_v3 = vpop.f32.mrb[4].mxu1 }
 0x3fa   : > { %v1066_v7 = vadd.f32 %v1065_v3, %v1024_v1  ;;  %v1067_v8 = vpop.f32.mrb[5].mxu1 }
 0x3fb   : > { %v1068_v9 = vadd.f32 %v1067_v8, %v1028_v2  ;;  %v1069_v10 = vpop.f32.mrb[6].mxu1 }
 0x3fc   : > { %v1072_v11 = vmax.f32 %v1066_v7, 0.0  ;;  %v1070_v12 = vpop.f32.mrb[7].mxu1 }
 0x3fd   : > { %v1073_v13 = vmax.f32 %v1068_v9, 0.0 }
 0x3fe   : > { %v1074_v15 = vadd.f32 %v1072_v11, %v1796_v54 }
 0x3ff   : > { %v1075_v16 = vadd.f32 %v1073_v13, %v1733_v14 }
 0x400   : > { %1076 = vst [vmem:[%s295_s10] sm:$0xff] %v1074_v15 }
 0x401   : > { %1077 = vst [vmem:[%s295_s10 + $0x8] sm:$0xff] %v1075_v16 }
 0x402 PF: > { %s18_s21 = sadd.s32 1, %s1562_s21  }
 0x403   : > { %p15_p9 = scmp.ge.s32.totalorder %s18_s21, 4  }
 0x405   :  { %17 = sbr.rel (!%p15_p9) target bundleno = 2 (0x2), region = 87 }
 0x40c   :  { %1099 = vsyncpa [#allocation3], 1 }
 0x40d   :  { %1101 = vsyncpa [#allocation3 + $0x1], 1 }
 0x40e   :  { %1102 = vsyncpa [#allocation5], 1 }

</bundles_post_ra>
